<compile_context>
chip_gen: v5e
topology: v5e:2x2
jax: 0.10.0
libtpu: 0.0.40
codegen_flags: <defaults>
</compile_context>

<pallas_src>
import functools

import jax
import jax.numpy as jnp
from jax.experimental import pallas as pl
from jax.experimental.pallas import tpu as pltpu


def _round_up(n, m):
    return ((n + m - 1) // m) * m


def actor_kernel(x_ref, w1_ref, b1_ref, w2_ref, b2_ref, w3_ref, b3_ref,
                 out_ref, *, act):
    # fc1 + ReLU  (bf16 MXU inputs, f32 accumulation)
    x = x_ref[...].astype(jnp.bfloat16)
    h1 = jnp.dot(x, w1_ref[...], preferred_element_type=jnp.float32)
    h1 = jnp.maximum(h1 + b1_ref[...], 0.0)
    # fc2 + ReLU
    h2 = jnp.dot(h1.astype(jnp.bfloat16), w2_ref[...],
                 preferred_element_type=jnp.float32)
    h2 = jnp.maximum(h2 + b2_ref[...], 0.0)
    # fc3: action dim padded to 128 lanes in-register; padded columns carry a
    # -1e30 bias so they vanish (exp -> 0) in the softmax.
    logits = jnp.dot(h2.astype(jnp.bfloat16), w3_ref[...],
                     preferred_element_type=jnp.float32)
    logits = logits + b3_ref[...]
    # Numerically stable softmax over the last dim (exact divide so rows sum
    # to 1 to f32 precision).
    m = jnp.max(logits, axis=-1, keepdims=True)
    e = jnp.exp(logits - m)
    denom = jnp.sum(e, axis=-1, keepdims=True)
    probs = e / denom
    # Store only the real action lanes -> no 16x HBM write amplification.
    out_ref[...] = probs[:, :act].astype(out_ref.dtype)


def actor_forward(x, kparams, action_size, *, tm=1024):
    """x: (batch, input_size) f32.  Returns (batch, action_size) f32 softmax."""
    w1, b1, w2, b2, w3p, b3p = kparams
    batch, in_dim = x.shape

    # Row tile: single big tile for small batches, but keep >= 2 grid steps
    # when possible so the parallel batch axis can use both TCs on v7x.
    bp8 = _round_up(batch, 8)
    tm = min(tm, max(8, _round_up(pl.cdiv(bp8, 2), 8)))
    bp = _round_up(bp8, tm)
    xp = x if bp == batch else jnp.pad(x, ((0, bp - batch), (0, 0)))

    # Weights/biases: full array, constant index_map -> fetched once, stay
    # VMEM-resident across grid steps.
    resident = lambda a: pl.BlockSpec(a.shape, lambda i: (0,) * a.ndim)

    out = pl.pallas_call(
        functools.partial(actor_kernel, act=action_size),
        out_shape=jax.ShapeDtypeStruct((bp, action_size), jnp.float32),
        grid=(bp // tm,),
        in_specs=[
            pl.BlockSpec((tm, in_dim), lambda i: (i, 0)),  # activations: tiled
            resident(w1), resident(b1),
            resident(w2), resident(b2),
            resident(w3p), resident(b3p),
        ],
        out_specs=pl.BlockSpec((tm, action_size), lambda i: (i, 0)),
        compiler_params=pltpu.CompilerParams(
            dimension_semantics=("parallel",),  # batch tiles across TCs on v7x
        ),
    )(xp, w1, b1, w2, b2, w3p, b3p)

    return out[:batch]


def init_params(key, input_size, hidden_size, action_size):
    # PyTorch nn.Linear default init: U(-1/sqrt(fan_in), 1/sqrt(fan_in)).
    # Weights stored pre-transposed (in, out), all f32 here.
    ks = jax.random.split(key, 6)

    def lin(kw, kb, fan_in, fan_out):
        bound = 1.0 / jnp.sqrt(fan_in)
        w = jax.random.uniform(kw, (fan_in, fan_out), jnp.float32, -bound, bound)
        b = jax.random.uniform(kb, (1, fan_out), jnp.float32, -bound, bound)
        return w, b

    w1, b1 = lin(ks[0], ks[1], input_size, hidden_size)
    w2, b2 = lin(ks[2], ks[3], hidden_size, hidden_size)
    w3, b3 = lin(ks[4], ks[5], hidden_size, action_size)
    return (w1, b1, w2, b2, w3, b3)


def prepare_params(params, *, lanes=128):
    """One-time prep for the kernel: bf16 weights, fc3 padded to a lane-dense
    128-column block with a -1e30 bias on the padded logits."""
    w1, b1, w2, b2, w3, b3 = params
    hid, act = w3.shape
    act_pad = _round_up(act, lanes)
    w3p = jnp.zeros((hid, act_pad), jnp.float32).at[:, :act].set(w3)
    b3p = jnp.full((1, act_pad), -1e30, jnp.float32).at[:, :act].set(b3)
    bf = jnp.bfloat16
    return (w1.astype(bf), b1, w2.astype(bf), b2, w3p.astype(bf), b3p)


def reference_forward(x, params):
    # Pure-JAX reference using the same bf16-weight / f32-accumulate recipe.
    w1, b1, w2, b2, w3, b3 = params
    bf = jnp.bfloat16
    h = jax.nn.relu(jnp.dot(x.astype(bf), w1.astype(bf),
                            preferred_element_type=jnp.float32) + b1)
    h = jax.nn.relu(jnp.dot(h.astype(bf), w2.astype(bf),
                            preferred_element_type=jnp.float32) + b2)
    logits = jnp.dot(h.astype(bf), w3.astype(bf),
                     preferred_element_type=jnp.float32) + b3
    return jax.nn.softmax(logits, axis=-1)


if __name__ == "__main__":
    input_size, hidden_size, action_size = 16, 32, 8
    batch = 200  # padded to 208 rows -> 2 grid steps of tm=104

    key = jax.random.PRNGKey(0)
    k_x, k_p = jax.random.split(key)
    x = jax.random.normal(k_x, (batch, input_size), dtype=jnp.float32)
    params = init_params(k_p, input_size, hidden_size, action_size)
    kparams = prepare_params(params)  # one-time prep (outside the hot path)

    fwd = jax.jit(functools.partial(actor_forward, action_size=action_size))
    out = jax.block_until_ready(fwd(x, kparams))

    ref = reference_forward(x, params)
    assert out.shape == (batch, action_size)
    # bf16 MXU inputs => relaxed tolerance vs the f32 PyTorch-style math.
    assert jnp.allclose(out, ref, atol=2e-3, rtol=2e-3), "mismatch vs JAX reference"
    # Exact divide in-kernel => rows sum to 1 to f32 precision.
    assert jnp.allclose(jnp.sum(out, axis=-1), 1.0, atol=1e-3), \
        "softmax rows must sum to 1"

    print("KERNEL_OK")
</pallas_src>

<mosaic_0001>
module attributes {stable_mosaic.version = 11 : i64} {
  func.func @actor_kernel(%arg0: i32, %arg1: memref<104x16xf32, #tpu.memory_space<vmem>>, %arg2: memref<16x32xbf16, #tpu.memory_space<vmem>>, %arg3: memref<1x32xf32, #tpu.memory_space<vmem>>, %arg4: memref<32x32xbf16, #tpu.memory_space<vmem>>, %arg5: memref<1x32xf32, #tpu.memory_space<vmem>>, %arg6: memref<32x128xbf16, #tpu.memory_space<vmem>>, %arg7: memref<1x128xf32, #tpu.memory_space<vmem>>, %arg8: memref<104x8xf32, #tpu.memory_space<vmem>>) attributes {dimension_semantics = [#tpu.dimension_semantics<parallel>], iteration_bounds = array<i64: 2>, scalar_prefetch = 0 : i64, scratch_operands = 0 : i64, tpu.core_type = #tpu.core_type<tc>, window_params = [{transform_indices = @transform_0, window_bounds = array<i64: 104, 16>}, {pipeline_mode = #tpu.pipeline_mode<synchronous>, transform_indices = @transform_1, window_bounds = array<i64: 16, 32>}, {pipeline_mode = #tpu.pipeline_mode<synchronous>, transform_indices = @transform_2, window_bounds = array<i64: 1, 32>}, {pipeline_mode = #tpu.pipeline_mode<synchronous>, transform_indices = @transform_3, window_bounds = array<i64: 32, 32>}, {pipeline_mode = #tpu.pipeline_mode<synchronous>, transform_indices = @transform_4, window_bounds = array<i64: 1, 32>}, {pipeline_mode = #tpu.pipeline_mode<synchronous>, transform_indices = @transform_5, window_bounds = array<i64: 32, 128>}, {pipeline_mode = #tpu.pipeline_mode<synchronous>, transform_indices = @transform_6, window_bounds = array<i64: 1, 128>}, {transform_indices = @transform_7, window_bounds = array<i64: 104, 8>}]} {
    %c0 = arith.constant 0 : index
    %c0_0 = arith.constant 0 : index
    %0 = vector.load %arg1[%c0, %c0_0] : memref<104x16xf32, #tpu.memory_space<vmem>>, vector<104x16xf32>
    %1 = arith.truncf %0 : vector<104x16xf32> to vector<104x16xbf16>
    %c0_1 = arith.constant 0 : index
    %c0_2 = arith.constant 0 : index
    %2 = vector.load %arg2[%c0_1, %c0_2] : memref<16x32xbf16, #tpu.memory_space<vmem>>, vector<16x32xbf16>
    %cst = arith.constant dense<0.000000e+00> : vector<104x32xf32>
    %3 = tpu.matmul %1, %2, %cst {dimension_numbers = #tpu.dot_dimension_numbers<[1], [0], [0], [1], [0, 0, 1, 1], [], []>} : vector<104x16xbf16>, vector<16x32xbf16>, vector<104x32xf32> -> vector<104x32xf32>
    %c0_3 = arith.constant 0 : index
    %c0_4 = arith.constant 0 : index
    %4 = vector.load %arg3[%c0_3, %c0_4] : memref<1x32xf32, #tpu.memory_space<vmem>>, vector<1x32xf32>
    %5 = vector.broadcast %4 : vector<1x32xf32> to vector<104x32xf32>
    %6 = arith.addf %3, %5 : vector<104x32xf32>
    %cst_5 = arith.constant 0.000000e+00 : f32
    %7 = vector.broadcast %cst_5 : f32 to vector<104x32xf32>
    %8 = arith.maximumf %6, %7 : vector<104x32xf32>
    %9 = arith.truncf %8 : vector<104x32xf32> to vector<104x32xbf16>
    %c0_6 = arith.constant 0 : index
    %c0_7 = arith.constant 0 : index
    %10 = vector.load %arg4[%c0_6, %c0_7] : memref<32x32xbf16, #tpu.memory_space<vmem>>, vector<32x32xbf16>
    %cst_8 = arith.constant dense<0.000000e+00> : vector<104x32xf32>
    %11 = tpu.matmul %9, %10, %cst_8 {dimension_numbers = #tpu.dot_dimension_numbers<[1], [0], [0], [1], [0, 0, 1, 1], [], []>} : vector<104x32xbf16>, vector<32x32xbf16>, vector<104x32xf32> -> vector<104x32xf32>
    %c0_9 = arith.constant 0 : index
    %c0_10 = arith.constant 0 : index
    %12 = vector.load %arg5[%c0_9, %c0_10] : memref<1x32xf32, #tpu.memory_space<vmem>>, vector<1x32xf32>
    %13 = vector.broadcast %12 : vector<1x32xf32> to vector<104x32xf32>
    %14 = arith.addf %11, %13 : vector<104x32xf32>
    %cst_11 = arith.constant 0.000000e+00 : f32
    %15 = vector.broadcast %cst_11 : f32 to vector<104x32xf32>
    %16 = arith.maximumf %14, %15 : vector<104x32xf32>
    %17 = arith.truncf %16 : vector<104x32xf32> to vector<104x32xbf16>
    %c0_12 = arith.constant 0 : index
    %c0_13 = arith.constant 0 : index
    %18 = vector.load %arg6[%c0_12, %c0_13] : memref<32x128xbf16, #tpu.memory_space<vmem>>, vector<32x128xbf16>
    %cst_14 = arith.constant dense<0.000000e+00> : vector<104x128xf32>
    %19 = tpu.matmul %17, %18, %cst_14 {dimension_numbers = #tpu.dot_dimension_numbers<[1], [0], [0], [1], [0, 0, 1, 1], [], []>} : vector<104x32xbf16>, vector<32x128xbf16>, vector<104x128xf32> -> vector<104x128xf32>
    %c0_15 = arith.constant 0 : index
    %c0_16 = arith.constant 0 : index
    %20 = vector.load %arg7[%c0_15, %c0_16] : memref<1x128xf32, #tpu.memory_space<vmem>>, vector<1x128xf32>
    %21 = vector.broadcast %20 : vector<1x128xf32> to vector<104x128xf32>
    %22 = arith.addf %19, %21 : vector<104x128xf32>
    %cst_17 = arith.constant dense<0xFF800000> : vector<104xf32>
    %23 = vector.multi_reduction <maximumf>, %22, %cst_17 [1] : vector<104x128xf32> to vector<104xf32>
    %24 = vector.shape_cast %23 : vector<104xf32> to vector<104x1xf32>
    %25 = vector.broadcast %24 : vector<104x1xf32> to vector<104x128xf32>
    %26 = arith.subf %22, %25 : vector<104x128xf32>
    %27 = math.exp %26 : vector<104x128xf32>
    %cst_18 = arith.constant dense<0.000000e+00> : vector<104xf32>
    %28 = vector.multi_reduction <add>, %27, %cst_18 [1] : vector<104x128xf32> to vector<104xf32>
    %29 = vector.shape_cast %28 : vector<104xf32> to vector<104x1xf32>
    %30 = vector.broadcast %29 : vector<104x1xf32> to vector<104x128xf32>
    %31 = arith.divf %27, %30 : vector<104x128xf32>
    %32 = vector.extract_strided_slice %31 {offsets = [0, 0], sizes = [104, 8], strides = [1, 1]} : vector<104x128xf32> to vector<104x8xf32>
    %c0_19 = arith.constant 0 : index
    %c0_20 = arith.constant 0 : index
    %33 = vector.load %arg8[%c0_19, %c0_20] : memref<104x8xf32, #tpu.memory_space<vmem>>, vector<104x8xf32>
    tpu.vector_store %arg8[%c0_19, %c0_20], %32 {strides = array<i32>} : memref<104x8xf32, #tpu.memory_space<vmem>>, vector<104x8xf32>,
    return
  }
  func.func @transform_0(%arg0: i32) -> (i32, i32) {
    %c0_i32 = arith.constant 0 : i32
    %c0_i32_0 = arith.constant 0 : i32
    return %arg0, %c0_i32 : i32, i32
  }
  func.func @transform_1(%arg0: i32) -> (i32, i32) {
    %c0_i32 = arith.constant 0 : i32
    %c0_i32_0 = arith.constant 0 : i32
    %c0_i32_1 = arith.constant 0 : i32
    return %c0_i32, %c0_i32_0 : i32, i32
  }
  func.func @transform_2(%arg0: i32) -> (i32, i32) {
    %c0_i32 = arith.constant 0 : i32
    %c0_i32_0 = arith.constant 0 : i32
    %c0_i32_1 = arith.constant 0 : i32
    return %c0_i32, %c0_i32_0 : i32, i32
  }
  func.func @transform_3(%arg0: i32) -> (i32, i32) {
    %c0_i32 = arith.constant 0 : i32
    %c0_i32_0 = arith.constant 0 : i32
    %c0_i32_1 = arith.constant 0 : i32
    return %c0_i32, %c0_i32_0 : i32, i32
  }
  func.func @transform_4(%arg0: i32) -> (i32, i32) {
    %c0_i32 = arith.constant 0 : i32
    %c0_i32_0 = arith.constant 0 : i32
    %c0_i32_1 = arith.constant 0 : i32
    return %c0_i32, %c0_i32_0 : i32, i32
  }
  func.func @transform_5(%arg0: i32) -> (i32, i32) {
    %c0_i32 = arith.constant 0 : i32
    %c0_i32_0 = arith.constant 0 : i32
    %c0_i32_1 = arith.constant 0 : i32
    return %c0_i32, %c0_i32_0 : i32, i32
  }
  func.func @transform_6(%arg0: i32) -> (i32, i32) {
    %c0_i32 = arith.constant 0 : i32
    %c0_i32_0 = arith.constant 0 : i32
    %c0_i32_1 = arith.constant 0 : i32
    return %c0_i32, %c0_i32_0 : i32, i32
  }
  func.func @transform_7(%arg0: i32) -> (i32, i32) {
    %c0_i32 = arith.constant 0 : i32
    %c0_i32_0 = arith.constant 0 : i32
    return %arg0, %c0_i32 : i32, i32
  }
}

</mosaic_0001>

<bundles_post_ra>
// kernel: actor_forward.1
= control target key start
LH: loop header
LB: loop body
LE: loop exit
PB: predicated region body
PF: predicated region fallthrough
CT: control target
= control target key end

     0   :  { %s1116_s24 = smov 0   ;;  %s1285_s0 = inlined_call_operand.vmem [shape: f32[208,16], index: 0, kind: input, shape index: {}]   ;;  %s1286_s1 = inlined_call_operand.vmem [shape: bf16[16,32], index: 1, kind: input, shape index: {}]   ;;  %s1287_s2 = inlined_call_operand.vmem [shape: f32[1,32], index: 2, kind: input, shape index: {}]   ;;  %s1288_s3 = inlined_call_operand.vmem [shape: bf16[32,32], index: 3, kind: input, shape index: {}]   ;;  %s1289_s4 = inlined_call_operand.vmem [shape: f32[1,32], index: 4, kind: input, shape index: {}]   ;;  %s1290_s5 = inlined_call_operand.vmem [shape: bf16[32,128], index: 5, kind: input, shape index: {}]   ;;  %s1291_s6 = inlined_call_operand.vmem [shape: f32[1,128], index: 6, kind: input, shape index: {}]   ;;  %s1292_s7 = inlined_call_operand.vmem [shape: f32[208,8], index: 7, kind: output, shape index: {}]  }
   0x1 LB: > { %s945_s25 = sadd.s32 4294967295, %s1074_s24   ;;  %p949_p0 = scmp.ge.s32.totalorder %s1074_s24, 1  ;;  %s1074_s24 = sphi %s1116_s24, %s17_s24  }
   0x2   : > { %p238_p1 = scmp.lt.s32.totalorder %s1074_s24, 3 }
   0x4   : > { %p239_p2 = pnand %p949_p0, %p238_p1 }
   0x5   : > { %s270_s28 = smul.u32 (!%p239_p2), 13, %s945_s25 }
   0x6   : > { %242 = sbr.rel (%p239_p2) target bundleno = 796 (0x31c), region = 48 }
   0x7   : > { %p271_p3 = scmp.lt.s32.totalorder (!%p239_p2), %s270_s28, 25 }
   0xb   : > { %v995_v0 = vld [vmem:[%s1286_s1] sm:$0xff]  ;;  %s1294_s28 = smov (!%p271_p3, %s270_s28), 25  ;;  %vm315_vm0 = vcmask 130048   ;;  %v997_v21 = vld [vmem:[%s1288_s3 + $0x8] sm:$0xff]  ;;  %vm420_vm1 = vcmask 261120   ;;  %vm875_vm6 = vcmask 64512  }
   0xc   : > { %344 = vmatpush.bf16.msra.mxu0 %v995_v0  ;;  %1000 = vmatpush.bf16.msra.mxu1 %v995_v0  ;;  %s950_s29 = sshll.u32 %s1294_s28, 3  ;;  %v996_v22 = vld [vmem:[%s1288_s3] sm:$0xff] }
   0xd   : > { %s274_s9 = scalar_lea.vmem %s1285_s0, %s950_s29  ;;  %1001 = vmatpush.bf16.msra.mxu3 %v997_v21  ;;  %v1013_v24 = vld [vmem:[%s1287_s2] ss:$0 sm:$0xff]  ;;  %s1241_s27 = scalar_lea.vmem %s1292_s7, %s950_s29 }
   0xe   : > { %v283_v1 = vld [vmem:[%s274_s9] sm:$0xff]  ;;  %v284_v2 = vld [vmem:[%s274_s9 + $0x8] sm:$0xff]  ;;  %v285_v4 = vld [vmem:[%s274_s9 + $0x10] sm:$0xff] }
   0xf   : > { %v296_v3 = vpack.c.bf16 %v284_v2, %v283_v1  ;;  %v286_v5 = vld [vmem:[%s274_s9 + $0x18] sm:$0xff]  ;;  %v287_v7 = vld [vmem:[%s274_s9 + $0x20] sm:$0xff]  ;;  %v288_v8 = vld [vmem:[%s274_s9 + $0x28] sm:$0xff] }
  0x10   : > { %v297_v6 = vpack.c.bf16 %v286_v5, %v285_v4  ;;  %v298_v9 = vpack.c.bf16 %v288_v8, %v287_v7  ;;  %v289_v10 = vld [vmem:[%s274_s9 + $0x30] sm:$0xff]  ;;  %v290_v11 = vld [vmem:[%s274_s9 + $0x38] sm:$0xff]  ;;  %v295_v13 = vld [vmem:[%s274_s9 + $0x60] sm:$0xff]  ;;  %448 = vmatpush.bf16.msrb.mxu1 %v997_v21 }
  0x11   : > { %956 = vmatmul.msk.bf16.vlgmr.msra.gmra.mxu0 %vm315_vm0, %v296_v3  ;;  %v299_v12 = vpack.c.bf16 %v290_v11, %v289_v10  ;;  %v302_v14 = vpack.c.bf16 %v295_v13, %v295_v13  ;;  %v291_v15 = vld [vmem:[%s274_s9 + $0x40] sm:$0xff]  ;;  %v292_v16 = vld [vmem:[%s274_s9 + $0x48] sm:$0xff]  ;;  %v293_v18 = vld [vmem:[%s274_s9 + $0x50] sm:$0xff]  ;;  %1002 = vmatpush.bf16.msra.mxu3 %v996_v22 }
  0x12   : > { %v300_v17 = vpack.c.bf16 %v292_v16, %v291_v15  ;;  %v294_v19 = vld [vmem:[%s274_s9 + $0x58] sm:$0xff]  ;;  %v999_v7 = vld [vmem:[%s1290_s5 + $0x8] sm:$0xff]  ;;  %v998_v8 = vld [vmem:[%s1290_s5] sm:$0xff] }
  0x13   : > { %962 = vmatmul.msk.bf16.vlgmr.msra.gmra.mxu1 %vm315_vm0, %v302_v14  ;;  %v301_v20 = vpack.c.bf16 %v294_v19, %v293_v18  ;;  %1003 = vmatpush.bf16.msra.mxu2 %v999_v7  ;;  %v1014_v10 = vld [vmem:[%s1289_s4] ss:$0 sm:$0xff] }
  0x14   : > { %449 = vmatpush.bf16.msrb.mxu1 %v996_v22 }
  0x17   : > { %1004 = vmatpush.bf16.msra.mxu2 %v998_v8 }
  0x18   : > { %552 = vmatpush.bf16.msra.mxu1 %v999_v7 }
  0x1c   : > { %553 = vmatpush.bf16.msra.mxu1 %v998_v8 }
  0x21   : > { %957 = vmatmul.msk.bf16.gmra.mxu0 %vm315_vm0, %v297_v6 }
  0x31   : > { %958 = vmatmul.msk.bf16.gmra.mxu0 %vm315_vm0, %v298_v9 }
  0x41   : > { %959 = vmatmul.msk.bf16.gmra.mxu0 %vm315_vm0, %v299_v12 }
  0x51   : > { %960 = vmatmul.msk.bf16.gmra.mxu0 %vm315_vm0, %v300_v17 }
  0x61   : > { %961 = vmatmul.msk.bf16.gmra.mxu0 %vm315_vm0, %v301_v20 }
  0x8e   : > { %v346_v23 = vpop.f32.mrf.mxu0 }
  0x8f   : > { %v347_v25 = vadd.f32 %v1013_v24, %v346_v23 }
  0x90   : > { %v376_v52 = vpop.f32.mrf.mxu1 }
  0x91   : > { %v380_v28 = vmax.f32 %v347_v25, 0.0  ;;  %v377_v4 = vadd.f32 %v1013_v24, %v376_v52 }
  0x93   : > { %v392_v5 = vmax.f32 %v377_v4, 0.0 }
  0x95   : > { %v399_v6 = vpack.c.bf16 %v392_v5, %v392_v5 }
  0x96   : > { %v348_v26 = vpop.f32.mrf.mxu0 }
  0x97   : > { %v349_v27 = vadd.f32 %v1013_v24, %v348_v26 }
  0x98   : > { %v378_v55 = vpop.f32.mrf.mxu1 }
  0x99   : > { %v381_v29 = vmax.f32 %v349_v27, 0.0 }
  0x9b   : > { %v393_v30 = vpack.c.bf16 %v381_v29, %v380_v28 }
  0x9d   : > { %971 = vmatmul.msk.bf16.vlgmr.msrb.gmra.mxu1 %vm420_vm1, %v393_v30 }
  0x9e   : > { %v351_v31 = vpop.f32.mrf.mxu0 }
  0x9f   : > { %v352_v32 = vadd.f32 %v1013_v24, %v351_v31 }
  0xa1   : > { %v382_v35 = vmax.f32 %v352_v32, 0.0 }
  0xa6   : > { %v353_v33 = vpop.f32.mrf.mxu0 }
  0xa7   : > { %v354_v34 = vadd.f32 %v1013_v24, %v353_v33 }
  0xa9   : > { %v383_v36 = vmax.f32 %v354_v34, 0.0 }
  0xab   : > { %v394_v37 = vpack.c.bf16 %v383_v36, %v382_v35 }
  0xad   : > { %972 = vmatmul.msk.bf16.vlgmr.msra.gmra.mxu3 %vm420_vm1, %v394_v37 }
  0xae   : > { %v356_v38 = vpop.f32.mrf.mxu0 }
  0xaf   : > { %v357_v39 = vadd.f32 %v1013_v24, %v356_v38 }
  0xb1   : > { %v384_v42 = vmax.f32 %v357_v39, 0.0 }
  0xb6   : > { %v358_v40 = vpop.f32.mrf.mxu0 }
  0xb7   : > { %v359_v41 = vadd.f32 %v1013_v24, %v358_v40 }
  0xb9   : > { %v385_v43 = vmax.f32 %v359_v41, 0.0 }
  0xbb   : > { %v395_v44 = vpack.c.bf16 %v385_v43, %v384_v42 }
  0xbd   : > { %973 = vmatmul.msk.bf16.gmra.mxu3 %vm420_vm1, %v395_v44 }
  0xbe   : > { %v361_v45 = vpop.f32.mrf.mxu0 }
  0xbf   : > { %v362_v46 = vadd.f32 %v1013_v24, %v361_v45 }
  0xc1   : > { %v386_v49 = vmax.f32 %v362_v46, 0.0 }
  0xc6   : > { %v363_v47 = vpop.f32.mrf.mxu0 }
  0xc7   : > { %v364_v48 = vadd.f32 %v1013_v24, %v363_v47 }
  0xc9   : > { %v387_v50 = vmax.f32 %v364_v48, 0.0 }
  0xcb   : > { %v396_v51 = vpack.c.bf16 %v387_v50, %v386_v49 }
  0xcd   : > { %974 = vmatmul.msk.bf16.gmra.mxu3 %vm420_vm1, %v396_v51 }
  0xce   : > { %v366_v53 = vpop.f32.mrf.mxu0 }
  0xcf   : > { %v367_v54 = vadd.f32 %v1013_v24, %v366_v53 }
  0xd1   : > { %v388_v58 = vmax.f32 %v367_v54, 0.0 }
  0xd6   : > { %v368_v56 = vpop.f32.mrf.mxu0 }
  0xd7   : > { %v369_v57 = vadd.f32 %v1013_v24, %v368_v56 }
  0xd9   : > { %v389_v59 = vmax.f32 %v369_v57, 0.0  ;;  %v1015_v57 = vld [vmem:[%s1291_s6] ss:$0 sm:$0xff] }
  0xdb   : > { %v397_v60 = vpack.c.bf16 %v389_v59, %v388_v58 }
  0xdd   : > { %975 = vmatmul.msk.bf16.gmra.mxu3 %vm420_vm1, %v397_v60 }
  0xde   : > { %v371_v61 = vpop.f32.mrf.mxu0 }
  0xdf   : > { %v372_v62 = vadd.f32 %v1013_v24, %v371_v61 }
  0xe1   : > { %v390_v1 = vmax.f32 %v372_v62, 0.0 }
  0xe6   : > { %v373_v63 = vpop.f32.mrf.mxu0 }
  0xe7   : > { %v374_v0 = vadd.f32 %v1013_v24, %v373_v63 }
  0xe9   : > { %v391_v2 = vmax.f32 %v374_v0, 0.0 }
  0xeb   : > { %v398_v3 = vpack.c.bf16 %v391_v2, %v390_v1 }
  0xed   : > { %976 = vmatmul.msk.bf16.gmra.mxu3 %vm420_vm1, %v398_v3 }
  0xfd   : > { %977 = vmatmul.msk.bf16.gmra.mxu3 %vm420_vm1, %v399_v6 }
 0x11a   : > { %v451_v9 = vpop.f32.mrf.mxu1 }
 0x11b   : > { %v452_v11 = vadd.f32 %v1014_v10, %v451_v9 }
 0x11d   : > { %v485_v14 = vmax.f32 %v452_v11, 0.0 }
 0x122   : > { %v453_v12 = vpop.f32.mrf.mxu1 }
 0x123   : > { %v454_v13 = vadd.f32 %v1014_v10, %v453_v12 }
 0x125   : > { %v486_v15 = vmax.f32 %v454_v13, 0.0 }
 0x127   : > { %v498_v16 = vpack.c.bf16 %v486_v15, %v485_v14 }
 0x129   : > { %986 = vmatmul.msk.bf16.vlgmr.msra.gmra.mxu1 %vm420_vm1, %v498_v16 }
 0x130   : > { %v456_v17 = vpop.f32.mrf.mxu3 }
 0x131   : > { %v457_v18 = vadd.f32 %v1014_v10, %v456_v17 }
 0x133   : > { %v487_v21 = vmax.f32 %v457_v18, 0.0 }
 0x138   : > { %v458_v19 = vpop.f32.mrf.mxu3 }
 0x139   : > { %v459_v20 = vadd.f32 %v1014_v10, %v458_v19 }
 0x13b   : > { %v488_v22 = vmax.f32 %v459_v20, 0.0 }
 0x13d   : > { %v499_v23 = vpack.c.bf16 %v488_v22, %v487_v21 }
 0x13f   : > { %987 = vmatmul.msk.bf16.vlgmr.msra.gmra.mxu2 %vm420_vm1, %v499_v23 }
 0x140   : > { %v461_v24 = vpop.f32.mrf.mxu3 }
 0x141   : > { %v462_v25 = vadd.f32 %v1014_v10, %v461_v24 }
 0x143   : > { %v489_v28 = vmax.f32 %v462_v25, 0.0 }
 0x148   : > { %v463_v26 = vpop.f32.mrf.mxu3 }
 0x149   : > { %v464_v27 = vadd.f32 %v1014_v10, %v463_v26 }
 0x14b   : > { %v490_v29 = vmax.f32 %v464_v27, 0.0 }
 0x14d   : > { %v500_v30 = vpack.c.bf16 %v490_v29, %v489_v28 }
 0x14f   : > { %988 = vmatmul.msk.bf16.gmra.mxu2 %vm420_vm1, %v500_v30 }
 0x150   : > { %v466_v31 = vpop.f32.mrf.mxu3 }
 0x151   : > { %v467_v32 = vadd.f32 %v1014_v10, %v466_v31 }
 0x153   : > { %v491_v35 = vmax.f32 %v467_v32, 0.0 }
 0x158   : > { %v468_v33 = vpop.f32.mrf.mxu3 }
 0x159   : > { %v469_v34 = vadd.f32 %v1014_v10, %v468_v33 }
 0x15b   : > { %v492_v36 = vmax.f32 %v469_v34, 0.0 }
 0x15d   : > { %v501_v37 = vpack.c.bf16 %v492_v36, %v491_v35 }
 0x15f   : > { %989 = vmatmul.msk.bf16.gmra.mxu2 %vm420_vm1, %v501_v37 }
 0x160   : > { %v471_v38 = vpop.f32.mrf.mxu3 }
 0x161   : > { %v472_v39 = vadd.f32 %v1014_v10, %v471_v38 }
 0x163   : > { %v493_v42 = vmax.f32 %v472_v39, 0.0 }
 0x168   : > { %v473_v40 = vpop.f32.mrf.mxu3 }
 0x169   : > { %v474_v41 = vadd.f32 %v1014_v10, %v473_v40 }
 0x16b   : > { %v494_v43 = vmax.f32 %v474_v41, 0.0 }
 0x16d   : > { %v502_v44 = vpack.c.bf16 %v494_v43, %v493_v42 }
 0x16f   : > { %990 = vmatmul.msk.bf16.gmra.mxu2 %vm420_vm1, %v502_v44 }
 0x170   : > { %v476_v45 = vpop.f32.mrf.mxu3 }
 0x171   : > { %v477_v46 = vadd.f32 %v1014_v10, %v476_v45 }
 0x173   : > { %v495_v49 = vmax.f32 %v477_v46, 0.0 }
 0x178   : > { %v478_v47 = vpop.f32.mrf.mxu3 }
 0x179   : > { %v479_v48 = vadd.f32 %v1014_v10, %v478_v47 }
 0x17b   : > { %v496_v50 = vmax.f32 %v479_v48, 0.0 }
 0x17d   : > { %v503_v51 = vpack.c.bf16 %v496_v50, %v495_v49 }
 0x17f   : > { %991 = vmatmul.msk.bf16.gmra.mxu2 %vm420_vm1, %v503_v51 }
 0x180   : > { %v481_v52 = vpop.f32.mrf.mxu3 }
 0x181   : > { %v482_v53 = vadd.f32 %v1014_v10, %v481_v52 }
 0x183   : > { %v497_v54 = vmax.f32 %v482_v53, 0.0 }
 0x185   : > { %v504_v56 = vpack.c.bf16 %v497_v54, %v497_v54 }
 0x188   : > { %v483_v55 = vpop.f32.mrf.mxu3 }
 0x18f   : > { %992 = vmatmul.msk.bf16.gmra.mxu2 %vm420_vm1, %v504_v56 }
 0x1a6   : > { %v555_v58 = vpop.f32.mrf.mxu1 }
 0x1a7   : > { %v556_v59 = vadd.f32 %v1015_v57, %v555_v58 }
 0x1a9   : > { %589 = vmax.xlane.f32.xlu0 %v556_v59 }
 0x1ae   : > { %v557_v60 = vpop.f32.mrf.mxu1 }
 0x1af   : > { %v558_v61 = vadd.f32 %v1015_v57, %v557_v60 }
 0x1b1   : > { %591 = vmax.xlane.f32.xlu0 %v558_v61 }
 0x1c2   : > { %v560_v62 = vpop.f32.mrf.mxu2 }
 0x1c3   : > { %v561_v63 = vadd.f32 %v1015_v57, %v560_v62 }
 0x1c5   : > { %593 = vmax.xlane.f32.xlu1 %v561_v63 }
 0x1ca   : > { %v562_v0 = vpop.f32.mrf.mxu2 }
 0x1cb   : > { %v563_v1 = vadd.f32 %v1015_v57, %v562_v0 }
 0x1cd   : > { %595 = vmax.xlane.f32.xlu1 %v563_v1 }
 0x1d2   : > { %v565_v2 = vpop.f32.mrf.mxu2 }
 0x1d3   : > { %v566_v3 = vadd.f32 %v1015_v57, %v565_v2 }
 0x1d5   : > { %597 = vmax.xlane.f32.xlu2 %v566_v3 }
 0x1da   : > { %v567_v4 = vpop.f32.mrf.mxu2 }
 0x1db   : > { %v568_v5 = vadd.f32 %v1015_v57, %v567_v4 }
 0x1dd   : > { %599 = vmax.xlane.f32.xlu2 %v568_v5 }
 0x1e2   : > { %v570_v6 = vpop.f32.mrf.mxu2 }
 0x1e3   : > { %v571_v7 = vadd.f32 %v1015_v57, %v570_v6 }
 0x1e5   : > { %601 = vmax.xlane.f32.xlu0 %v571_v7 }
 0x1ea   : > { %v572_v8 = vpop.f32.mrf.mxu2 }
 0x1eb   : > { %v573_v9 = vadd.f32 %v1015_v57, %v572_v8 }
 0x1ed   : > { %603 = vmax.xlane.f32.xlu1 %v573_v9 }
 0x1f2   : > { %v575_v10 = vpop.f32.mrf.mxu2 }
 0x1f3   : > { %v1177_v11 = vadd.f32 %v1015_v57, %v575_v10 }
 0x1f5   : > { %605 = vmax.xlane.f32.xlu2 %v1177_v11 }
 0x1fa   : > { %v577_v12 = vpop.f32.mrf.mxu2 }
 0x1fb   : > { %v1180_v13 = vadd.f32 %v1015_v57, %v577_v12 }
 0x1fd   : > { %607 = vmax.xlane.f32.xlu0 %v1180_v13 }
 0x202   : > { %v580_v14 = vpop.f32.mrf.mxu2 }
 0x203   : > { %v1183_v15 = vadd.f32 %v1015_v57, %v580_v14 }
 0x205   : > { %609 = vmax.xlane.f32.xlu1 %v1183_v15 }
 0x20a   : > { %v582_v16 = vpop.f32.mrf.mxu2 }
 0x20b   : > { %v1186_v17 = vadd.f32 %v1015_v57, %v582_v16 }
 0x20d   : > { %611 = vmax.xlane.f32.xlu2 %v1186_v17 }
 0x212   : > { %v585_v18 = vpop.f32.mrf.mxu2 }
 0x213   : > { %v1189_v19 = vadd.f32 %v1015_v57, %v585_v18 }
 0x215   : > { %613 = vmax.xlane.f32.xlu0 %v1189_v19 }
 0x21a   : > { %v587_v20 = vpop.f32.mrf.mxu2 }
 0x21c   : > { %v590_v21 = vpop.xlane.xlu0 %589 }
 0x21d   : > { %v615_v22 = vsub.f32 %v556_v59, %v590_v21 }
 0x21f   : > { %v628_v23 = vmul.f32 1.442695, %v615_v22 }
 0x221   : > { %1016 = vpow2.f32 %v628_v23 }
 0x224   : > { %v592_v24 = vpop.xlane.xlu0 %591 }
 0x225   : > { %v616_v25 = vsub.f32 %v558_v61, %v592_v24 }
 0x227   : > { %v1192_v26 = vpop.eup %1016  ;;  %v630_v27 = vmul.f32 1.442695, %v616_v25 }
 0x228   : > { %654 = vadd.xlane.f32.xlu1 %v1192_v26 }
 0x229   : > { %1018 = vpow2.f32 %v630_v27 }
 0x22f   : > { %v1195_v28 = vpop.eup %1018 }
 0x230   : > { %656 = vadd.xlane.f32.xlu2 %v1195_v28 }
 0x238   : > { %v594_v29 = vpop.xlane.xlu1 %593 }
 0x239   : > { %v617_v30 = vsub.f32 %v561_v63, %v594_v29 }
 0x23b   : > { %v632_v31 = vmul.f32 1.442695, %v617_v30 }
 0x23d   : > { %1020 = vpow2.f32 %v632_v31 }
 0x240   : > { %v596_v32 = vpop.xlane.xlu1 %595 }
 0x241   : > { %v618_v33 = vsub.f32 %v563_v1, %v596_v32 }
 0x243   : > { %v1198_v34 = vpop.eup %1020  ;;  %v634_v35 = vmul.f32 1.442695, %v618_v33 }
 0x244   : > { %658 = vadd.xlane.f32.xlu0 %v1198_v34 }
 0x245   : > { %1022 = vpow2.f32 %v634_v35 }
 0x248   : > { %v598_v36 = vpop.xlane.xlu2 %597 }
 0x249   : > { %v619_v37 = vsub.f32 %v566_v3, %v598_v36 }
 0x24b   : > { %v1201_v38 = vpop.eup %1022  ;;  %v636_v39 = vmul.f32 1.442695, %v619_v37 }
 0x24c   : > { %660 = vadd.xlane.f32.xlu1 %v1201_v38 }
 0x24d   : > { %1024 = vpow2.f32 %v636_v39 }
 0x250   : > { %v600_v40 = vpop.xlane.xlu2 %599 }
 0x251   : > { %v620_v41 = vsub.f32 %v568_v5, %v600_v40 }
 0x253   : > { %v1204_v42 = vpop.eup %1024  ;;  %v638_v43 = vmul.f32 1.442695, %v620_v41 }
 0x254   : > { %662 = vadd.xlane.f32.xlu2 %v1204_v42 }
 0x255   : > { %1026 = vpow2.f32 %v638_v43 }
 0x258   : > { %v602_v44 = vpop.xlane.xlu0 %601 }
 0x259   : > { %v621_v45 = vsub.f32 %v571_v7, %v602_v44 }
 0x25b   : > { %v1207_v46 = vpop.eup %1026  ;;  %v640_v47 = vmul.f32 1.442695, %v621_v45 }
 0x25c   : > { %664 = vadd.xlane.f32.xlu0 %v1207_v46 }
 0x25d   : > { %1028 = vpow2.f32 %v640_v47 }
 0x260   : > { %v604_v48 = vpop.xlane.xlu1 %603 }
 0x261   : > { %v622_v49 = vsub.f32 %v573_v9, %v604_v48 }
 0x263   : > { %v1210_v50 = vpop.eup %1028  ;;  %v642_v51 = vmul.f32 1.442695, %v622_v49 }
 0x264   : > { %666 = vadd.xlane.f32.xlu1 %v1210_v50 }
 0x265   : > { %1030 = vpow2.f32 %v642_v51 }
 0x268   : > { %v606_v52 = vpop.xlane.xlu2 %605 }
 0x269   : > { %v623_v53 = vsub.f32 %v1177_v11, %v606_v52 }
 0x26b   : > { %v1214_v54 = vpop.eup %1030  ;;  %v644_v55 = vmul.f32 1.442695, %v623_v53 }
 0x26c   : > { %668 = vadd.xlane.f32.xlu2 %v1214_v54 }
 0x26d   : > { %1032 = vpow2.f32 %v644_v55 }
 0x270   : > { %v608_v56 = vpop.xlane.xlu0 %607 }
 0x271   : > { %v624_v57 = vsub.f32 %v1180_v13, %v608_v56 }
 0x273   : > { %v1218_v58 = vpop.eup %1032  ;;  %v646_v59 = vmul.f32 1.442695, %v624_v57 }
 0x274   : > { %670 = vadd.xlane.f32.xlu0 %v1218_v58 }
 0x275   : > { %1034 = vpow2.f32 %v646_v59 }
 0x278   : > { %v610_v60 = vpop.xlane.xlu1 %609 }
 0x279   : > { %v625_v61 = vsub.f32 %v1183_v15, %v610_v60 }
 0x27b   : > { %v1222_v62 = vpop.eup %1034  ;;  %v648_v63 = vmul.f32 1.442695, %v625_v61 }
 0x27c   : > { %672 = vadd.xlane.f32.xlu1 %v1222_v62 }
 0x27d   : > { %1036 = vpow2.f32 %v648_v63 }
 0x280   : > { %v612_v0 = vpop.xlane.xlu2 %611 }
 0x281   : > { %v626_v1 = vsub.f32 %v1186_v17, %v612_v0 }
 0x283   : > { %v1226_v2 = vpop.eup %1036  ;;  %v650_v3 = vmul.f32 1.442695, %v626_v1 }
 0x284   : > { %674 = vadd.xlane.f32.xlu2 %v1226_v2 }
 0x285   : > { %1038 = vpow2.f32 %v650_v3 }
 0x288   : > { %v614_v4 = vpop.xlane.xlu0 %613 }
 0x289   : > { %v627_v5 = vsub.f32 %v1189_v19, %v614_v4 }
 0x28b   : > { %v1230_v6 = vpop.eup %1038  ;;  %v652_v7 = vmul.f32 1.442695, %v627_v5 }
 0x28c   : > { %676 = vadd.xlane.f32.xlu0 %v1230_v6 }
 0x28d   : > { %1040 = vpow2.f32 %v652_v7 }
 0x293   : > { %v1233_v8 = vpop.eup %1040 }
 0x294   : > { %678 = vadd.xlane.f32.xlu1 %v1233_v8 }
 0x29b   : > { %v655_v9 = vpop.xlane.xlu1 %654 }
 0x29c   : > { %1042 = vrcp.f32 %v655_v9  ;;  %v691_v14 = vand.u32 2147483648, %v655_v9  ;;  %v689_v16 = vand.u32 2147483647, %v655_v9  ;;  %vm685_vm3 = vweird.f32 %v655_v9 }
 0x29e   : > { %v692_v19 = vor.u32 1.1754944e-38, %v691_v14  ;;  %vm690_vm5 = vcmp.eq.f32.partialorder %v689_v16, 8.507059e+37 }
 0x2a2   : > { %v1043_v10 = vpop.eup %1042 }
 0x2a3   : > { %v681_v11 = vmul.f32 %v1043_v10, %v655_v9  ;;  %v657_v12 = vpop.xlane.xlu2 %656  ;;  %vm686_vm2 = vweird.f32 %v1043_v10 }
 0x2a4   : > { %1044 = vrcp.f32 %v657_v12  ;;  %vm687_vm4 = vmor %vm685_vm3, %vm686_vm2  ;;  %v706_v25 = vand.u32 2147483648, %v657_v12  ;;  %v704_v29 = vand.u32 2147483647, %v657_v12  ;;  %vm700_vm8 = vweird.f32 %v657_v12 }
 0x2a5   : > { %v682_v13 = vsub.f32 1.0, %v681_v11 }
 0x2a6   : > { %v707_v31 = vor.u32 1.1754944e-38, %v706_v25  ;;  %vm705_vm10 = vcmp.eq.f32.partialorder %v704_v29, 8.507059e+37 }
 0x2a7   : > { %v683_v15 = vmul.f32 %v1043_v10, %v682_v13 }
 0x2a9   : > { %v684_v17 = vadd.f32 %v1043_v10, %v683_v15 }
 0x2aa   : > { %v1045_v18 = vpop.eup %1044 }
 0x2ab   : > { %v688_v20 = vsel %vm687_vm4, %v1043_v10, %v684_v17  ;;  %v696_v21 = vmul.f32 %v1045_v18, %v657_v12  ;;  %vm701_vm7 = vweird.f32 %v1045_v18 }
 0x2ac   : > { %v693_v22 = vsel %vm690_vm5, %v692_v19, %v688_v20  ;;  %vm702_vm9 = vmor %vm700_vm8, %vm701_vm7 }
 0x2ad   : > { %v694_v23 = vmul.f32 %v1192_v26, %v693_v22  ;;  %v697_v24 = vsub.f32 1.0, %v696_v21 }
 0x2af   : > { %876 = vst.msk [vmem:[%s1241_s27] sm:$0xff] %vm875_vm6, %v694_v23  ;;  %v698_v27 = vmul.f32 %v1045_v18, %v697_v24 }
 0x2b1   : > { %v699_v30 = vadd.f32 %v1045_v18, %v698_v27 }
 0x2b3   : > { %v703_v32 = vsel %vm702_vm9, %v1045_v18, %v699_v30 }
 0x2b4   : > { %v708_v33 = vsel %vm705_vm10, %v707_v31, %v703_v32 }
 0x2b5   : > { %v709_v35 = vmul.f32 %v1195_v28, %v708_v33 }
 0x2b7   : > { %877 = vst.msk [vmem:[%s1241_s27 + $0x8] sm:$0xff] %vm875_vm6, %v709_v35  ;;  %v659_v36 = vpop.xlane.xlu0 %658 }
 0x2b8   : > { %1046 = vrcp.f32 %v659_v36  ;;  %v721_v41 = vand.u32 2147483648, %v659_v36  ;;  %v719_v44 = vand.u32 2147483647, %v659_v36  ;;  %vm715_vm12 = vweird.f32 %v659_v36 }
 0x2ba   : > { %v722_v48 = vor.u32 1.1754944e-38, %v721_v41  ;;  %vm720_vm14 = vcmp.eq.f32.partialorder %v719_v44, 8.507059e+37 }
 0x2be   : > { %v1047_v26 = vpop.eup %1046 }
 0x2bf   : > { %v711_v37 = vmul.f32 %v1047_v26, %v659_v36  ;;  %v661_v39 = vpop.xlane.xlu1 %660  ;;  %vm716_vm11 = vweird.f32 %v1047_v26 }
 0x2c0   : > { %1048 = vrcp.f32 %v661_v39  ;;  %vm717_vm13 = vmor %vm715_vm12, %vm716_vm11  ;;  %v736_v56 = vand.u32 2147483648, %v661_v39  ;;  %v734_v59 = vand.u32 2147483647, %v661_v39  ;;  %vm730_vm0 = vweird.f32 %v661_v39 }
 0x2c1   : > { %v712_v40 = vsub.f32 1.0, %v711_v37 }
 0x2c2   : > { %v737_v63 = vor.u32 1.1754944e-38, %v736_v56  ;;  %vm735_vm2 = vcmp.eq.f32.partialorder %v734_v59, 8.507059e+37 }
 0x2c3   : > { %v713_v43 = vmul.f32 %v1047_v26, %v712_v40 }
 0x2c5   : > { %v714_v45 = vadd.f32 %v1047_v26, %v713_v43 }
 0x2c6   : > { %v1049_v47 = vpop.eup %1048 }
 0x2c7   : > { %v718_v28 = vsel %vm717_vm13, %v1047_v26, %v714_v45  ;;  %v726_v49 = vmul.f32 %v1049_v47, %v661_v39  ;;  %v663_v51 = vpop.xlane.xlu2 %662  ;;  %vm731_vm15 = vweird.f32 %v1049_v47 }
 0x2c8   : > { %v723_v52 = vsel %vm720_vm14, %v722_v48, %v718_v28  ;;  %1050 = vrcp.f32 %v663_v51  ;;  %vm732_vm1 = vmor %vm730_vm0, %vm731_vm15  ;;  %v751_v7 = vand.u32 2147483648, %v663_v51  ;;  %v749_v10 = vand.u32 2147483647, %v663_v51 }
 0x2c9   : > { %v724_v53 = vmul.f32 %v1198_v34, %v723_v52  ;;  %v727_v55 = vsub.f32 1.0, %v726_v49  ;;  %vm745_vm4 = vweird.f32 %v663_v51 }
 0x2ca   : > { %v752_v13 = vor.u32 1.1754944e-38, %v751_v7  ;;  %vm750_vm7 = vcmp.eq.f32.partialorder %v749_v10, 8.507059e+37 }
 0x2cb   : > { %878 = vst.msk [vmem:[%s1241_s27 + $0x10] sm:$0xff] %vm875_vm6, %v724_v53  ;;  %v728_v57 = vmul.f32 %v1049_v47, %v727_v55 }
 0x2cd   : > { %v729_v60 = vadd.f32 %v1049_v47, %v728_v57 }
 0x2ce   : > { %v1051_v61 = vpop.eup %1050 }
 0x2cf   : > { %v733_v0 = vsel %vm732_vm1, %v1049_v47, %v729_v60  ;;  %v741_v1 = vmul.f32 %v1051_v61, %v663_v51  ;;  %v665_v3 = vpop.xlane.xlu0 %664  ;;  %vm746_vm3 = vweird.f32 %v1051_v61 }
 0x2d0   : > { %v738_v4 = vsel %vm735_vm2, %v737_v63, %v733_v0  ;;  %1052 = vrcp.f32 %v665_v3  ;;  %vm747_vm5 = vmor %vm745_vm4, %vm746_vm3  ;;  %v766_v19 = vand.u32 2147483648, %v665_v3  ;;  %v764_v21 = vand.u32 2147483647, %v665_v3 }
 0x2d1   : > { %v739_v34 = vmul.f32 %v1201_v38, %v738_v4  ;;  %v742_v5 = vsub.f32 1.0, %v741_v1  ;;  %vm760_vm9 = vweird.f32 %v665_v3 }
 0x2d2   : > { %v767_v24 = vor.u32 1.1754944e-38, %v766_v19  ;;  %vm765_vm11 = vcmp.eq.f32.partialorder %v764_v21, 8.507059e+37 }
 0x2d3   : > { %879 = vst.msk [vmem:[%s1241_s27 + $0x18] sm:$0xff] %vm875_vm6, %v739_v34  ;;  %v743_v9 = vmul.f32 %v1051_v61, %v742_v5 }
 0x2d5   : > { %v744_v11 = vadd.f32 %v1051_v61, %v743_v9 }
 0x2d6   : > { %v1053_v12 = vpop.eup %1052 }
 0x2d7   : > { %v748_v14 = vsel %vm747_vm5, %v1051_v61, %v744_v11  ;;  %v756_v15 = vmul.f32 %v1053_v12, %v665_v3  ;;  %v667_v16 = vpop.xlane.xlu1 %666  ;;  %vm761_vm8 = vweird.f32 %v1053_v12 }
 0x2d8   : > { %v753_v17 = vsel %vm750_vm7, %v752_v13, %v748_v14  ;;  %1054 = vrcp.f32 %v667_v16  ;;  %vm762_vm10 = vmor %vm760_vm9, %vm761_vm8  ;;  %v781_v32 = vand.u32 2147483648, %v667_v16  ;;  %v779_v35 = vand.u32 2147483647, %v667_v16 }
 0x2d9   : > { %v754_v38 = vmul.f32 %v1204_v42, %v753_v17  ;;  %v757_v18 = vsub.f32 1.0, %v756_v15  ;;  %vm775_vm13 = vweird.f32 %v667_v16 }
 0x2da   : > { %v782_v37 = vor.u32 1.1754944e-38, %v781_v32  ;;  %vm780_vm15 = vcmp.eq.f32.partialorder %v779_v35, 8.507059e+37 }
 0x2db   : > { %880 = vst.msk [vmem:[%s1241_s27 + $0x20] sm:$0xff] %vm875_vm6, %v754_v38  ;;  %v758_v20 = vmul.f32 %v1053_v12, %v757_v18 }
 0x2dd   : > { %v759_v22 = vadd.f32 %v1053_v12, %v758_v20 }
 0x2de   : > { %v1055_v23 = vpop.eup %1054 }
 0x2df   : > { %v763_v25 = vsel %vm762_vm10, %v1053_v12, %v759_v22  ;;  %v771_v27 = vmul.f32 %v1055_v23, %v667_v16  ;;  %v669_v29 = vpop.xlane.xlu2 %668  ;;  %vm776_vm12 = vweird.f32 %v1055_v23 }
 0x2e0   : > { %v768_v30 = vsel %vm765_vm11, %v767_v24, %v763_v25  ;;  %1056 = vrcp.f32 %v669_v29  ;;  %vm777_vm14 = vmor %vm775_vm13, %vm776_vm12  ;;  %v796_v45 = vand.u32 2147483648, %v669_v29  ;;  %v794_v48 = vand.u32 2147483647, %v669_v29 }
 0x2e1   : > { %v769_v42 = vmul.f32 %v1207_v46, %v768_v30  ;;  %v772_v31 = vsub.f32 1.0, %v771_v27  ;;  %vm790_vm1 = vweird.f32 %v669_v29 }
 0x2e2   : > { %v797_v51 = vor.u32 1.1754944e-38, %v796_v45  ;;  %vm795_vm3 = vcmp.eq.f32.partialorder %v794_v48, 8.507059e+37 }
 0x2e3   : > { %881 = vst.msk [vmem:[%s1241_s27 + $0x28] sm:$0xff] %vm875_vm6, %v769_v42  ;;  %v773_v33 = vmul.f32 %v1055_v23, %v772_v31 }
 0x2e5   : > { %v774_v36 = vadd.f32 %v1055_v23, %v773_v33 }
 0x2e6   : > { %v1057_v26 = vpop.eup %1056 }
 0x2e7   : > { %v778_v39 = vsel %vm777_vm14, %v1055_v23, %v774_v36  ;;  %v786_v40 = vmul.f32 %v1057_v26, %v669_v29  ;;  %v671_v41 = vpop.xlane.xlu0 %670  ;;  %vm791_vm0 = vweird.f32 %v1057_v26 }
 0x2e8   : > { %v783_v43 = vsel %vm780_vm15, %v782_v37, %v778_v39  ;;  %1058 = vrcp.f32 %v671_v41  ;;  %vm792_vm2 = vmor %vm790_vm1, %vm791_vm0  ;;  %v811_v59 = vand.u32 2147483648, %v671_v41  ;;  %v809_v61 = vand.u32 2147483647, %v671_v41 }
 0x2e9   : > { %v784_v46 = vmul.f32 %v1210_v50, %v783_v43  ;;  %v787_v44 = vsub.f32 1.0, %v786_v40  ;;  %vm805_vm5 = vweird.f32 %v671_v41 }
 0x2ea   : > { %v812_v1 = vor.u32 1.1754944e-38, %v811_v59  ;;  %vm810_vm8 = vcmp.eq.f32.partialorder %v809_v61, 8.507059e+37 }
 0x2eb   : > { %882 = vst.msk [vmem:[%s1241_s27 + $0x30] sm:$0xff] %vm875_vm6, %v784_v46  ;;  %v788_v47 = vmul.f32 %v1057_v26, %v787_v44 }
 0x2ed   : > { %v789_v28 = vadd.f32 %v1057_v26, %v788_v47 }
 0x2ee   : > { %v1059_v49 = vpop.eup %1058 }
 0x2ef   : > { %v793_v52 = vsel %vm792_vm2, %v1057_v26, %v789_v28  ;;  %v801_v53 = vmul.f32 %v1059_v49, %v671_v41  ;;  %v673_v55 = vpop.xlane.xlu1 %672  ;;  %vm806_vm4 = vweird.f32 %v1059_v49 }
 0x2f0   : > { %v798_v56 = vsel %vm795_vm3, %v797_v51, %v793_v52  ;;  %1060 = vrcp.f32 %v673_v55  ;;  %vm807_vm7 = vmor %vm805_vm5, %vm806_vm4  ;;  %v826_v9 = vand.u32 2147483648, %v673_v55  ;;  %v824_v11 = vand.u32 2147483647, %v673_v55 }
 0x2f1   : > { %v799_v50 = vmul.f32 %v1214_v54, %v798_v56  ;;  %v802_v57 = vsub.f32 1.0, %v801_v53  ;;  %vm820_vm10 = vweird.f32 %v673_v55 }
 0x2f2   : > { %v827_v14 = vor.u32 1.1754944e-38, %v826_v9  ;;  %vm825_vm12 = vcmp.eq.f32.partialorder %v824_v11, 8.507059e+37 }
 0x2f3   : > { %883 = vst.msk [vmem:[%s1241_s27 + $0x38] sm:$0xff] %vm875_vm6, %v799_v50  ;;  %v803_v60 = vmul.f32 %v1059_v49, %v802_v57 }
 0x2f5   : > { %v804_v63 = vadd.f32 %v1059_v49, %v803_v60 }
 0x2f6   : > { %v1061_v0 = vpop.eup %1060 }
 0x2f7   : > { %v808_v3 = vsel %vm807_vm7, %v1059_v49, %v804_v63  ;;  %v816_v4 = vmul.f32 %v1061_v0, %v673_v55  ;;  %v675_v34 = vpop.xlane.xlu2 %674  ;;  %vm821_vm9 = vweird.f32 %v1061_v0 }
 0x2f8   : > { %v813_v5 = vsel %vm810_vm8, %v812_v1, %v808_v3  ;;  %1062 = vrcp.f32 %v675_v34  ;;  %vm822_vm11 = vmor %vm820_vm10, %vm821_vm9  ;;  %v841_v19 = vand.u32 2147483648, %v675_v34  ;;  %v839_v21 = vand.u32 2147483647, %v675_v34 }
 0x2f9   : > { %v814_v54 = vmul.f32 %v1218_v58, %v813_v5  ;;  %v817_v7 = vsub.f32 1.0, %v816_v4  ;;  %vm835_vm14 = vweird.f32 %v675_v34 }
 0x2fa   : > { %v842_v24 = vor.u32 1.1754944e-38, %v841_v19  ;;  %vm840_vm0 = vcmp.eq.f32.partialorder %v839_v21, 8.507059e+37 }
 0x2fb   : > { %884 = vst.msk [vmem:[%s1241_s27 + $0x40] sm:$0xff] %vm875_vm6, %v814_v54  ;;  %v818_v10 = vmul.f32 %v1061_v0, %v817_v7 }
 0x2fd   : > { %v819_v12 = vadd.f32 %v1061_v0, %v818_v10 }
 0x2fe   : > { %v1063_v13 = vpop.eup %1062 }
 0x2ff   : > { %v823_v15 = vsel %vm822_vm11, %v1061_v0, %v819_v12  ;;  %v831_v16 = vmul.f32 %v1063_v13, %v675_v34  ;;  %v677_v17 = vpop.xlane.xlu0 %676  ;;  %vm836_vm13 = vweird.f32 %v1063_v13 }
 0x300   : > { %v828_v38 = vsel %vm825_vm12, %v827_v14, %v823_v15  ;;  %1064 = vrcp.f32 %v677_v17  ;;  %vm837_vm15 = vmor %vm835_vm14, %vm836_vm13  ;;  %v856_v31 = vand.u32 2147483648, %v677_v17  ;;  %v854_v33 = vand.u32 2147483647, %v677_v17 }
 0x301   : > { %v829_v58 = vmul.f32 %v1222_v62, %v828_v38  ;;  %v832_v18 = vsub.f32 1.0, %v831_v16  ;;  %vm850_vm2 = vweird.f32 %v677_v17 }
 0x302   : > { %v857_v26 = vor.u32 1.1754944e-38, %v856_v31  ;;  %vm855_vm4 = vcmp.eq.f32.partialorder %v854_v33, 8.507059e+37 }
 0x303   : > { %885 = vst.msk [vmem:[%s1241_s27 + $0x48] sm:$0xff] %vm875_vm6, %v829_v58  ;;  %v833_v20 = vmul.f32 %v1063_v13, %v832_v18 }
 0x305   : > { %v834_v22 = vadd.f32 %v1063_v13, %v833_v20 }
 0x306   : > { %v1065_v23 = vpop.eup %1064 }
 0x307   : > { %v838_v25 = vsel %vm837_vm15, %v1063_v13, %v834_v22  ;;  %v846_v27 = vmul.f32 %v1065_v23, %v677_v17  ;;  %v679_v29 = vpop.xlane.xlu1 %678  ;;  %vm851_vm1 = vweird.f32 %v1065_v23 }
 0x308   : > { %v843_v30 = vsel %vm840_vm0, %v842_v24, %v838_v25  ;;  %1066 = vrcp.f32 %v679_v29  ;;  %vm852_vm3 = vmor %vm850_vm2, %vm851_vm1  ;;  %v871_v43 = vand.u32 2147483648, %v679_v29  ;;  %v869_v44 = vand.u32 2147483647, %v679_v29 }
 0x309   : > { %v844_v62 = vmul.f32 %v1226_v2, %v843_v30  ;;  %v847_v42 = vsub.f32 1.0, %v846_v27  ;;  %vm865_vm7 = vweird.f32 %v679_v29 }
 0x30a   : > { %v872_v47 = vor.u32 1.1754944e-38, %v871_v43  ;;  %vm870_vm9 = vcmp.eq.f32.partialorder %v869_v44, 8.507059e+37 }
 0x30b   : > { %886 = vst.msk [vmem:[%s1241_s27 + $0x50] sm:$0xff] %vm875_vm6, %v844_v62  ;;  %v848_v32 = vmul.f32 %v1065_v23, %v847_v42 }
 0x30d   : > { %v849_v35 = vadd.f32 %v1065_v23, %v848_v32 }
 0x30e   : > { %v1067_v36 = vpop.eup %1066 }
 0x30f   : > { %v853_v37 = vsel %vm852_vm3, %v1065_v23, %v849_v35  ;;  %v861_v39 = vmul.f32 %v1067_v36, %v679_v29  ;;  %vm866_vm5 = vweird.f32 %v1067_v36 }
 0x310   : > { %v858_v40 = vsel %vm855_vm4, %v857_v26, %v853_v37  ;;  %vm867_vm8 = vmor %vm865_vm7, %vm866_vm5 }
 0x311   : > { %v859_v2 = vmul.f32 %v1230_v6, %v858_v40  ;;  %v862_v41 = vsub.f32 1.0, %v861_v39 }
 0x313   : > { %887 = vst.msk [vmem:[%s1241_s27 + $0x58] sm:$0xff] %vm875_vm6, %v859_v2  ;;  %v863_v46 = vmul.f32 %v1067_v36, %v862_v41 }
 0x315   : > { %v864_v45 = vadd.f32 %v1067_v36, %v863_v46 }
 0x317   : > { %v868_v48 = vsel %vm867_vm8, %v1067_v36, %v864_v45 }
 0x318   : > { %v873_v28 = vsel %vm870_vm9, %v872_v47, %v868_v48 }
 0x319   : > { %v874_v49 = vmul.f32 %v1233_v8, %v873_v28 }
 0x31b   : > { %888 = vst.msk [vmem:[%s1241_s27 + $0x60] sm:$0xff] %vm875_vm6, %v874_v49 }
 0x31c PF: > { %s17_s24 = sadd.s32 1, %s1074_s24  }
 0x31d   : > { %p14_p4 = scmp.ge.s32.totalorder %s17_s24, 4  }
 0x31f   :  { %16 = sbr.rel (!%p14_p4) target bundleno = 1 (0x1), region = 78 }

</bundles_post_ra>
